<compile_context>
chip_gen: v6e
topology: v6e:2x2x1
jax: 0.10.0
libtpu: 0.0.40
codegen_flags: <defaults>
</compile_context>

<pallas_src>
import functools
import math
from typing import List, Sequence

import jax
import jax.numpy as jnp
from jax.experimental import pallas as pl
from jax.experimental.pallas import tpu as pltpu


def _ff_kernel(n_layers: int, x_ref, *refs):
    """Fused MLP over one batch tile: (tm, D0) -> (tm, Dn)."""
    o_ref = refs[-1]
    params = refs[:-1]            # [W1, b1, W2, b2, ..., Wn, bn]
    h = x_ref[...].astype(jnp.float32)
    for li in range(n_layers):
        w = params[2 * li][...]
        b = params[2 * li + 1][...]          # (1, Dout) -> broadcasts over rows
        h = jnp.dot(h, w, preferred_element_type=jnp.float32) + b
        if li < n_layers - 1:
            h = jnp.maximum(h, 0.0)          # ReLU (VPU, free under MXU)
        # Dropout: identity in eval mode (see TODO above).
    o_ref[...] = h.astype(o_ref.dtype)


def _pick_batch_tile(n_rows: int, feat_dims: Sequence[int],
                     vmem_budget_bytes: int = 8 * 1024 * 1024) -> int:
    """Largest power-of-two batch tile that divides n_rows and keeps the
    double-buffered activation working set under a v7x-safe VMEM budget."""
    per_row_bytes = 4 * (feat_dims[0] + feat_dims[-1] + max(feat_dims))
    for t in (2048, 1024, 512, 256, 128, 64, 32, 16, 8):
        if t <= n_rows and n_rows % t == 0 and 2 * t * per_row_bytes <= vmem_budget_bytes:
            return t
    return n_rows


def ff_layers_forward(x: jnp.ndarray,
                      weights: List[jnp.ndarray],
                      biases: List[jnp.ndarray]) -> jnp.ndarray:
    """x: (..., inp_size); weights[i]: (Din_i, Dout_i); biases[i]: (Dout_i,)."""
    orig_shape = x.shape
    inp_size = orig_shape[-1]
    x2 = x.reshape(-1, inp_size)                    # flatten leading dims (Linear acts on last)
    n_rows = x2.shape[0]

    n_layers = len(weights)
    feat_dims = [inp_size] + [int(w.shape[1]) for w in weights]
    out_dim = feat_dims[-1]

    tm = _pick_batch_tile(n_rows, feat_dims)
    grid = (n_rows // tm,)

    biases2 = [b.reshape(1, -1) for b in biases]    # 2-D (1, Dout) VMEM tiles

    in_specs = [pl.BlockSpec((tm, inp_size), lambda i: (i, 0))]
    for w, b in zip(weights, biases2):
        # Full-extent blocks, constant index map: weights stay resident in VMEM.
        in_specs.append(pl.BlockSpec(w.shape, lambda i: (0, 0)))
        in_specs.append(pl.BlockSpec(b.shape, lambda i: (0, 0)))

    flat_params = [t for pair in zip(weights, biases2) for t in pair]

    out = pl.pallas_call(
        functools.partial(_ff_kernel, n_layers),
        out_shape=jax.ShapeDtypeStruct((n_rows, out_dim), x.dtype),
        grid_spec=pltpu.PrefetchScalarGridSpec(
            num_scalar_prefetch=0,
            grid=grid,
            in_specs=in_specs,
            out_specs=pl.BlockSpec((tm, out_dim), lambda i: (i, 0)),
        ),
        compiler_params=pltpu.CompilerParams(
            dimension_semantics=("parallel",),
        ),
    )(x2, *flat_params)

    return out.reshape(*orig_shape[:-1], out_dim)


if __name__ == "__main__":
    # Small shapes consistent with the module: batch=8, inp_size=32,
    # ff_sizes=[64, 128, 32]  (two hidden Linear+ReLU layers, final Linear).
    batch, inp_size = 8, 32
    ff_sizes = [64, 128, 32]

    key = jax.random.PRNGKey(0)
    keys = jax.random.split(key, 2 * len(ff_sizes) + 1)
    x = jax.random.normal(keys[0], (batch, inp_size), dtype=jnp.float32)

    weights, biases = [], []
    in_feat = inp_size
    for li, out_feat in enumerate(ff_sizes):
        scale = 1.0 / math.sqrt(in_feat)
        w = jax.random.normal(keys[1 + 2 * li], (in_feat, out_feat), jnp.float32) * scale
        b = jax.random.normal(keys[2 + 2 * li], (out_feat,), jnp.float32) * 0.01
        weights.append(w)
        biases.append(b)
        in_feat = out_feat

    out = ff_layers_forward(x, weights, biases)
    out = jax.block_until_ready(out)

    # Pure-JAX reference (eval-mode FFLayers: Linear/ReLU chain, dropout identity).
    h = x
    for li, (w, b) in enumerate(zip(weights, biases)):
        h = h @ w + b
        if li < len(ff_sizes) - 1:
            h = jnp.maximum(h, 0.0)
    ref = h

    assert out.shape == ref.shape == (batch, ff_sizes[-1])
    assert jnp.allclose(out, ref, atol=1e-5, rtol=1e-5), "mismatch vs reference"

    print("KERNEL_OK")
</pallas_src>

<mosaic_0001>
module attributes {stable_mosaic.version = 11 : i64} {
  func.func @_ff_kernel(%arg0: i32, %arg1: memref<8x32xf32, #tpu.memory_space<vmem>>, %arg2: memref<32x64xf32, #tpu.memory_space<vmem>>, %arg3: memref<1x64xf32, #tpu.memory_space<vmem>>, %arg4: memref<64x128xf32, #tpu.memory_space<vmem>>, %arg5: memref<1x128xf32, #tpu.memory_space<vmem>>, %arg6: memref<128x32xf32, #tpu.memory_space<vmem>>, %arg7: memref<1x32xf32, #tpu.memory_space<vmem>>, %arg8: memref<8x32xf32, #tpu.memory_space<vmem>>) attributes {dimension_semantics = [#tpu.dimension_semantics<parallel>], iteration_bounds = array<i64: 1>, scalar_prefetch = 0 : i64, scratch_operands = 0 : i64, tpu.core_type = #tpu.core_type<tc>, window_params = [{transform_indices = @transform_0, window_bounds = array<i64: 8, 32>}, {pipeline_mode = #tpu.pipeline_mode<synchronous>, transform_indices = @transform_1, window_bounds = array<i64: 32, 64>}, {pipeline_mode = #tpu.pipeline_mode<synchronous>, transform_indices = @transform_2, window_bounds = array<i64: 1, 64>}, {pipeline_mode = #tpu.pipeline_mode<synchronous>, transform_indices = @transform_3, window_bounds = array<i64: 64, 128>}, {pipeline_mode = #tpu.pipeline_mode<synchronous>, transform_indices = @transform_4, window_bounds = array<i64: 1, 128>}, {pipeline_mode = #tpu.pipeline_mode<synchronous>, transform_indices = @transform_5, window_bounds = array<i64: 128, 32>}, {pipeline_mode = #tpu.pipeline_mode<synchronous>, transform_indices = @transform_6, window_bounds = array<i64: 1, 32>}, {transform_indices = @transform_7, window_bounds = array<i64: 8, 32>}]} {
    %c0 = arith.constant 0 : index
    %c0_0 = arith.constant 0 : index
    %0 = vector.load %arg1[%c0, %c0_0] : memref<8x32xf32, #tpu.memory_space<vmem>>, vector<8x32xf32>
    %c0_1 = arith.constant 0 : index
    %c0_2 = arith.constant 0 : index
    %1 = vector.load %arg2[%c0_1, %c0_2] : memref<32x64xf32, #tpu.memory_space<vmem>>, vector<32x64xf32>
    %c0_3 = arith.constant 0 : index
    %c0_4 = arith.constant 0 : index
    %2 = vector.load %arg3[%c0_3, %c0_4] : memref<1x64xf32, #tpu.memory_space<vmem>>, vector<1x64xf32>
    %cst = arith.constant dense<0.000000e+00> : vector<8x64xf32>
    %3 = tpu.matmul %0, %1, %cst {dimension_numbers = #tpu.dot_dimension_numbers<[1], [0], [0], [1], [0, 0, 1, 1], [], []>} : vector<8x32xf32>, vector<32x64xf32>, vector<8x64xf32> -> vector<8x64xf32>
    %4 = vector.broadcast %2 : vector<1x64xf32> to vector<8x64xf32>
    %5 = arith.addf %3, %4 : vector<8x64xf32>
    %cst_5 = arith.constant 0.000000e+00 : f32
    %6 = vector.broadcast %cst_5 : f32 to vector<8x64xf32>
    %7 = arith.maximumf %5, %6 : vector<8x64xf32>
    %c0_6 = arith.constant 0 : index
    %c0_7 = arith.constant 0 : index
    %8 = vector.load %arg4[%c0_6, %c0_7] : memref<64x128xf32, #tpu.memory_space<vmem>>, vector<64x128xf32>
    %c0_8 = arith.constant 0 : index
    %c0_9 = arith.constant 0 : index
    %9 = vector.load %arg5[%c0_8, %c0_9] : memref<1x128xf32, #tpu.memory_space<vmem>>, vector<1x128xf32>
    %cst_10 = arith.constant dense<0.000000e+00> : vector<8x128xf32>
    %10 = tpu.matmul %7, %8, %cst_10 {dimension_numbers = #tpu.dot_dimension_numbers<[1], [0], [0], [1], [0, 0, 1, 1], [], []>} : vector<8x64xf32>, vector<64x128xf32>, vector<8x128xf32> -> vector<8x128xf32>
    %11 = vector.broadcast %9 : vector<1x128xf32> to vector<8x128xf32>
    %12 = arith.addf %10, %11 : vector<8x128xf32>
    %cst_11 = arith.constant 0.000000e+00 : f32
    %13 = vector.broadcast %cst_11 : f32 to vector<8x128xf32>
    %14 = arith.maximumf %12, %13 : vector<8x128xf32>
    %c0_12 = arith.constant 0 : index
    %c0_13 = arith.constant 0 : index
    %15 = vector.load %arg6[%c0_12, %c0_13] : memref<128x32xf32, #tpu.memory_space<vmem>>, vector<128x32xf32>
    %c0_14 = arith.constant 0 : index
    %c0_15 = arith.constant 0 : index
    %16 = vector.load %arg7[%c0_14, %c0_15] : memref<1x32xf32, #tpu.memory_space<vmem>>, vector<1x32xf32>
    %cst_16 = arith.constant dense<0.000000e+00> : vector<8x32xf32>
    %17 = tpu.matmul %14, %15, %cst_16 {dimension_numbers = #tpu.dot_dimension_numbers<[1], [0], [0], [1], [0, 0, 1, 1], [], []>} : vector<8x128xf32>, vector<128x32xf32>, vector<8x32xf32> -> vector<8x32xf32>
    %18 = vector.broadcast %16 : vector<1x32xf32> to vector<8x32xf32>
    %19 = arith.addf %17, %18 : vector<8x32xf32>
    %c0_17 = arith.constant 0 : index
    %c0_18 = arith.constant 0 : index
    %20 = vector.load %arg8[%c0_17, %c0_18] : memref<8x32xf32, #tpu.memory_space<vmem>>, vector<8x32xf32>
    tpu.vector_store %arg8[%c0_17, %c0_18], %19 {strides = array<i32>} : memref<8x32xf32, #tpu.memory_space<vmem>>, vector<8x32xf32>,
    return
  }
  func.func @transform_0(%arg0: i32) -> (i32, i32) {
    %c0_i32 = arith.constant 0 : i32
    %c0_i32_0 = arith.constant 0 : i32
    return %arg0, %c0_i32 : i32, i32
  }
  func.func @transform_1(%arg0: i32) -> (i32, i32) {
    %c0_i32 = arith.constant 0 : i32
    %c0_i32_0 = arith.constant 0 : i32
    %c0_i32_1 = arith.constant 0 : i32
    return %c0_i32, %c0_i32_0 : i32, i32
  }
  func.func @transform_2(%arg0: i32) -> (i32, i32) {
    %c0_i32 = arith.constant 0 : i32
    %c0_i32_0 = arith.constant 0 : i32
    %c0_i32_1 = arith.constant 0 : i32
    return %c0_i32, %c0_i32_0 : i32, i32
  }
  func.func @transform_3(%arg0: i32) -> (i32, i32) {
    %c0_i32 = arith.constant 0 : i32
    %c0_i32_0 = arith.constant 0 : i32
    %c0_i32_1 = arith.constant 0 : i32
    return %c0_i32, %c0_i32_0 : i32, i32
  }
  func.func @transform_4(%arg0: i32) -> (i32, i32) {
    %c0_i32 = arith.constant 0 : i32
    %c0_i32_0 = arith.constant 0 : i32
    %c0_i32_1 = arith.constant 0 : i32
    return %c0_i32, %c0_i32_0 : i32, i32
  }
  func.func @transform_5(%arg0: i32) -> (i32, i32) {
    %c0_i32 = arith.constant 0 : i32
    %c0_i32_0 = arith.constant 0 : i32
    %c0_i32_1 = arith.constant 0 : i32
    return %c0_i32, %c0_i32_0 : i32, i32
  }
  func.func @transform_6(%arg0: i32) -> (i32, i32) {
    %c0_i32 = arith.constant 0 : i32
    %c0_i32_0 = arith.constant 0 : i32
    %c0_i32_1 = arith.constant 0 : i32
    return %c0_i32, %c0_i32_0 : i32, i32
  }
  func.func @transform_7(%arg0: i32) -> (i32, i32) {
    %c0_i32 = arith.constant 0 : i32
    %c0_i32_0 = arith.constant 0 : i32
    return %arg0, %c0_i32 : i32, i32
  }
}

</mosaic_0001>

<bundles_post_ra>
// kernel: tpu_custom_call.1
= control target key start
LH: loop header
LB: loop body
LE: loop exit
PB: predicated region body
PF: predicated region fallthrough
CT: control target
= control target key end

     0   :  { %v438_v1 = vmov 0.0   ;;  %vm439_vm0 = vmmov 0   ;;  %s616_s0 = inlined_call_operand.vmem [shape: f32[8,32], index: 0, kind: input, shape index: {}]   ;;  %s617_s1 = inlined_call_operand.vmem [shape: f32[32,64], index: 1, kind: input, shape index: {}]   ;;  %s618_s2 = inlined_call_operand.vmem [shape: f32[1,64], index: 2, kind: input, shape index: {}]   ;;  %s619_s3 = inlined_call_operand.vmem [shape: f32[64,128], index: 3, kind: input, shape index: {}]   ;;  %s620_s4 = inlined_call_operand.vmem [shape: f32[1,128], index: 4, kind: input, shape index: {}]   ;;  %s621_s5 = inlined_call_operand.vmem [shape: f32[128,32], index: 5, kind: input, shape index: {}]   ;;  %s622_s6 = inlined_call_operand.vmem [shape: f32[1,32], index: 6, kind: input, shape index: {}]   ;;  %s623_s7 = inlined_call_operand.hbm [shape: f32[8,32], index: 7, kind: output, shape index: {}]  }
   0x1   :  { %v31_v0 = vld [vmem:[%s617_s1 + $0x18] sm:$0xff]  ;;  %348 = vmatprep.subr.mxu1 %v438_v1  ;;  %v30_v2 = vld [vmem:[%s617_s1 + $0x10] sm:$0xff]  ;;  %356 = vmatprep.mubr.msk.f32.mxu1 %vm439_vm0, %v438_v1  ;;  %v29_v3 = vld [vmem:[%s617_s1 + $0x8] sm:$0xff] }
   0x2   :  { %349 = vmatpush3.msra.mxu1 %v31_v0  ;;  %378 = vmatprep.subr.mxu0 %v438_v1 }
   0x3   :  { %350 = vmatprep.subr.mxu1 %v438_v1  ;;  %410 = vmatprep.mubr.msk.f32.mxu0 %vm439_vm0, %v438_v1 }
   0x4   :  { %12 = vsyncpa [#allocation3], 0  ;;  %351 = vmatpush3.msra.mxu1 %v30_v2  ;;  %v28_v4 = vld [vmem:[%s617_s1] sm:$0xff]  ;;  %vm39_vm1 = vcmask 261120   ;;  %v121_v6 = vld [vmem:[%s619_s3 + $0x38] sm:$0xff]  ;;  %vm129_vm2 = vcmask 523264  }
   0x5   :  { %352 = vmatprep.subr.mxu1 %v438_v1  ;;  %v27_v5 = vld [vmem:[%s616_s0] sm:$0xff]  ;;  %v120_v7 = vld [vmem:[%s619_s3 + $0x30] sm:$0xff]  ;;  %v119_v8 = vld [vmem:[%s619_s3 + $0x28] sm:$0xff]  ;;  %s440_s12 = smov [#allocation2]  }
   0x6   :  { %353 = vmatpush3.msra.mxu1 %v29_v3  ;;  %v118_v9 = vld [vmem:[%s619_s3 + $0x20] sm:$0xff]  ;;  %v117_v10 = vld [vmem:[%s619_s3 + $0x18] sm:$0xff]  ;;  %v116_v11 = vld [vmem:[%s619_s3 + $0x10] sm:$0xff]  ;;  %s304_s13 = sshll.u32 %s440_s12, 4  ;;  %s305_s13 = int_to_ptr.vmem [resolvable:$true] %s304_s13 }
   0x7   :  { %354 = vmatprep.subr.mxu1 %v438_v1  ;;  %v115_v12 = vld [vmem:[%s619_s3 + $0x8] sm:$0xff]  ;;  %v114_v13 = vld [vmem:[%s619_s3] sm:$0xff]  ;;  %v219_v14 = vld [vmem:[%s621_s5 + $0x78] sm:$0xff]  ;;  %p421_p1 = scmp.lt.s32.totalorder %s305_s13, %s305_s13 }
   0x8   :  { %355 = vmatpush3.msra.mxu1 %v28_v4  ;;  %v218_v15 = vld [vmem:[%s621_s5 + $0x70] sm:$0xff]  ;;  %379 = vmatpush3.msra.mxu0 %v219_v14  ;;  %v217_v16 = vld [vmem:[%s621_s5 + $0x68] sm:$0xff]  ;;  %v216_v17 = vld [vmem:[%s621_s5 + $0x60] sm:$0xff] }
   0x9   :  { %357 = vmatmul.mubr.msk.f32.vlgmr.msra.gmra.mxu1 %vm39_vm1, %v27_v5  ;;  %359 = vmatprep.subr.mxu1 %v438_v1  ;;  %v215_v18 = vld [vmem:[%s621_s5 + $0x58] sm:$0xff]  ;;  %v214_v19 = vld [vmem:[%s621_s5 + $0x50] sm:$0xff]  ;;  %v213_v20 = vld [vmem:[%s621_s5 + $0x48] sm:$0xff] }
   0xa   :  { %360 = vmatpush3.msra.mxu1 %v121_v6  ;;  %375 = vmatprep.mubr.msk.f32.mxu1 %vm439_vm0, %v438_v1  ;;  %v212_v21 = vld [vmem:[%s621_s5 + $0x40] sm:$0xff]  ;;  %v211_v22 = vld [vmem:[%s621_s5 + $0x38] sm:$0xff]  ;;  %v210_v23 = vld [vmem:[%s621_s5 + $0x30] sm:$0xff] }
   0xb   :  { %361 = vmatprep.subr.mxu1 %v438_v1  ;;  %380 = vmatprep.subr.mxu0 %v438_v1  ;;  %v209_v24 = vld [vmem:[%s621_s5 + $0x28] sm:$0xff]  ;;  %v208_v25 = vld [vmem:[%s621_s5 + $0x20] sm:$0xff]  ;;  %v207_v26 = vld [vmem:[%s621_s5 + $0x18] sm:$0xff] }
   0xc   :  { %362 = vmatpush3.msra.mxu1 %v120_v7  ;;  %381 = vmatpush3.msra.mxu0 %v218_v15  ;;  %v312_v27 = vld [vmem:[%s618_s2] ss:$0 sm:$0xff]  ;;  %v206_v32 = vld [vmem:[%s621_s5 + $0x10] sm:$0xff]  ;;  %v205_v33 = vld [vmem:[%s621_s5 + $0x8] sm:$0xff] }
   0xd   :  { %363 = vmatprep.subr.mxu1 %v438_v1  ;;  %382 = vmatprep.subr.mxu0 %v438_v1  ;;  %v204_v34 = vld [vmem:[%s621_s5] sm:$0xff]  ;;  %s416_s5 = scalar_lea.vmem %s305_s13, 128 }
   0xe   :  { %364 = vmatpush3.msra.mxu1 %v119_v8  ;;  %383 = vmatpush3.msra.mxu0 %v217_v16  ;;  %v314_v35 = vld [vmem:[%s620_s4] ss:$0 sm:$0xff]  ;;  %p417_p0 = scmp.ne.s32.totalorder %s305_s13, %s416_s5  ;;  %p422_p2 = scmp.lt.s32.totalorder %s416_s5, %s416_s5 }
   0xf   :  { %365 = vmatprep.subr.mxu1 %v438_v1  ;;  %384 = vmatprep.subr.mxu0 %v438_v1  ;;  %v316_v40 = vld [vmem:[%s622_s6] ss:$0 sm:$0xff] }
  0x10   :  { %366 = vmatpush3.msra.mxu1 %v118_v9  ;;  %385 = vmatpush3.msra.mxu0 %v216_v17  ;;  %p423_p3 = por %p422_p2, %p421_p1 }
  0x11   :  { %367 = vmatprep.subr.mxu1 %v438_v1  ;;  %386 = vmatprep.subr.mxu0 %v438_v1 }
  0x12   :  { %368 = vmatpush3.msra.mxu1 %v117_v10  ;;  %387 = vmatpush3.msra.mxu0 %v215_v18  ;;  %p424_p4 = pnand %p423_p3, %p417_p0 }
  0x13   :  { %369 = vmatprep.subr.mxu1 %v438_v1  ;;  %388 = vmatprep.subr.mxu0 %v438_v1 }
  0x14   :  { %370 = vmatpush3.msra.mxu1 %v116_v11  ;;  %389 = vmatpush3.msra.mxu0 %v214_v19 }
  0x15   :  { %371 = vmatprep.subr.mxu1 %v438_v1  ;;  %390 = vmatprep.subr.mxu0 %v438_v1 }
  0x16   :  { %372 = vmatpush3.msra.mxu1 %v115_v12  ;;  %391 = vmatpush3.msra.mxu0 %v213_v20 }
  0x17   :  { %373 = vmatprep.subr.mxu1 %v438_v1  ;;  %392 = vmatprep.subr.mxu0 %v438_v1 }
  0x18   :  { %374 = vmatpush3.msra.mxu1 %v114_v13  ;;  %393 = vmatpush3.msra.mxu0 %v212_v21 }
  0x19   :  { %394 = vmatprep.subr.mxu0 %v438_v1 }
  0x1a   :  { %395 = vmatpush3.msra.mxu0 %v211_v22 }
  0x1b   :  { %396 = vmatprep.subr.mxu0 %v438_v1 }
  0x1c   :  { %397 = vmatpush3.msra.mxu0 %v210_v23 }
  0x1d   :  { %398 = vmatprep.subr.mxu0 %v438_v1 }
  0x1e   :  { %399 = vmatpush3.msra.mxu0 %v209_v24 }
  0x1f   :  { %400 = vmatprep.subr.mxu0 %v438_v1 }
  0x20   :  { %401 = vmatpush3.msra.mxu0 %v208_v25 }
  0x21   :  { %402 = vmatprep.subr.mxu0 %v438_v1 }
  0x22   :  { %403 = vmatpush3.msra.mxu0 %v207_v26 }
  0x23   :  { %404 = vmatprep.subr.mxu0 %v438_v1 }
  0x24   :  { %405 = vmatpush3.msra.mxu0 %v206_v32 }
  0x25   :  { %406 = vmatprep.subr.mxu0 %v438_v1 }
  0x26   :  { %407 = vmatpush3.msra.mxu0 %v205_v33 }
  0x27   :  { %408 = vmatprep.subr.mxu0 %v438_v1 }
  0x28   :  { %409 = vmatpush3.msra.mxu0 %v204_v34 }
  0xc9   :  { %v109_v28 = vpop.f32.mrf.mxu1 }
  0xca   :  { %v110_v29 = vadd.f32 %v312_v27, %v109_v28 }
  0xcb   :  { %v358_v30 = vpop.f32.mrf.mxu1 }
  0xcc   :  { %v113_v31 = vmax.f32 %v110_v29, 0.0 }
  0xce   :  { %376 = vmatmul.mubr.msk.f32.vlgmr.msra.gmra.mxu1 %vm129_vm2, %v113_v31 }
 0x18e   :  { %v199_v36 = vpop.f32.mrf.mxu1 }
 0x18f   :  { %v200_v37 = vadd.f32 %v314_v35, %v199_v36 }
 0x190   :  { %v377_v38 = vpop.f32.mrf.mxu1 }
 0x191   :  { %v203_v39 = vmax.f32 %v200_v37, 0.0 }
 0x193   :  { %411 = vmatmul.mubr.f32.vlgmr.msra.gmra.mxu0 %v203_v39 }
 0x253   :  { %v293_v41 = vpop.f32.mrf.mxu0 }
 0x254   :  { %v294_v42 = vadd.f32 %v316_v40, %v293_v41 }
 0x255   :  { %v412_v43 = vpop.f32.mrf.mxu0 }
 0x256   :  { %297 = vst.msk [vmem:[#allocation2] sm:$0xff] %vm39_vm1, %v294_v42 }
 0x257   :  { %427 = shalt.err (!%p424_p4)
}
 0x258   :  { %307 = dma.vmem_to_hbm [thread:$0]  %s305_s13, 128, %s623_s7, [#allocation3]  }
 0x259   :  { %436 = dma.done.wait [#allocation3], 128  }
 0x25a   :  { %437 = vsyncadd [#allocation3], 4294967168 }
 0x25b   :  { %311 = vsyncpa [#allocation3], 1 }

</bundles_post_ra>
